<compile_context>
chip_gen: v6e
topology: v6e:2x2x1
jax: 0.10.0
libtpu: 0.0.40
codegen_flags: <defaults>
</compile_context>

<pallas_src>
import math

import jax
import jax.numpy as jnp
from jax.experimental import pallas as pl
from jax.experimental.pallas import tpu as pltpu


def _gather_pe_kernel(ids_ref, table_hbm, pe_ref, out_ref, gbuf, sem):
    """One grid step = one tile of `rpt` flattened (batch*seq) rows.

    ids_ref:   (padded_rows,) int32 in SMEM (scalar prefetch) -- all ids
    table_hbm: (V, D) embedding table, left in HBM (memory_space=pl.ANY)
    pe_ref:    (T, D) f32 positional-encoding table (grid-invariant block)
    out_ref:   (rpt, D) output tile (lane-dense)
    gbuf:      (rpt, D) VMEM scratch for the gathered rows
    sem:       (1,) DMA semaphore
    """
    i = pl.program_id(0)
    rpt, d = out_ref.shape
    t = pe_ref.shape[0]
    base = i * rpt

    # 1) Issue one row DMA per token: HBM table row -> VMEM gather buffer.
    @pl.loop(0, rpt)
    def _(m):
        tok = ids_ref[base + m]
        pltpu.make_async_copy(table_hbm.at[tok], gbuf.at[m], sem.at[0]).start()

    # 2) Wait for all rpt row copies (each wait consumes exactly one row-copy
    #    quantum on the shared semaphore; all copies are identically sized).
    @pl.loop(0, rpt)
    def _(m):
        pltpu.make_async_copy(table_hbm.at[0], gbuf.at[0], sem.at[0]).wait()

    # 3) Add the (T, D) positional encoding to every group of T rows and store
    #    a lane-dense (rpt, D) slab.  rpt % t == 0 by construction, so the
    #    reshape is a pure sublane regroup.
    emb = gbuf[...].astype(jnp.float32)                       # (rpt, d)
    pe = pe_ref[...].astype(jnp.float32)                      # (t, d)
    out = emb.reshape(rpt // t, t, d) + pe[None, :, :]
    out_ref[...] = out.reshape(rpt, d).astype(out_ref.dtype)


def sinusoidal_positional_encoding(seq_len: int, d_model: int) -> jnp.ndarray:
    """PE[pos, 2i] = sin(pos / 10000^(2i/d)); PE[pos, 2i+1] = cos(...)."""
    pos = jnp.arange(seq_len, dtype=jnp.float32)[:, None]           # (T, 1)
    i = jnp.arange(d_model, dtype=jnp.float32)[None, :]             # (1, D)
    angle_rates = jnp.power(10000.0, -(2.0 * jnp.floor(i / 2.0)) / d_model)
    angles = pos * angle_rates                                      # (T, D)
    pe = jnp.where((jnp.arange(d_model)[None, :] % 2) == 0,
                   jnp.sin(angles), jnp.cos(angles))
    return pe.astype(jnp.float32)


def _rows_per_tile(total_rows: int, seq_len: int, target: int = 1024) -> int:
    """Rows per grid step.

    Must be a multiple of lcm(seq_len, 8) (PE period & sublane alignment)
    unless a single full-extent tile is used.  ~1024 rows amortizes the
    ~0.35us/step overhead on v5e/v6e (sweep 512 on v7x's tighter VMEM).
    Small problems split into 2 tiles so both v7x TensorCores get work.
    """
    base = (seq_len * 8) // math.gcd(seq_len, 8)     # lcm(T, 8)
    if total_rows > target:
        return base * max(1, target // base)
    half = total_rows // 2
    if half >= base and half % base == 0:
        return half                                   # grid of 2 (v7x megacore)
    return total_rows                                 # single full-extent block


def input_id_encoder(x: jnp.ndarray,
                     emb_table: jnp.ndarray,
                     pe_table: jnp.ndarray,
                     *,
                     out_dtype=None,
                     rows_target: int = 1024) -> jnp.ndarray:
    """x: (N, T) int -> (N, T, D) embeddings + positional encodings."""
    N, T = x.shape
    V, D = emb_table.shape
    assert pe_table.shape == (T, D)
    out_dtype = out_dtype or emb_table.dtype

    total_rows = N * T
    rpt = _rows_per_tile(total_rows, T, rows_target)
    num_tiles = -(-total_rows // rpt)
    padded_rows = num_tiles * rpt

    ids = x.reshape(total_rows).astype(jnp.int32)
    # Clamp so an out-of-range id can never fault a DMA (nn.Embedding would
    # raise; clamping is the safe in-kernel behavior for untrusted inputs).
    ids = jnp.clip(ids, 0, V - 1)
    if padded_rows != total_rows:
        # Padded rows gather token 0; they are sliced off below.
        ids = jnp.pad(ids, (0, padded_rows - total_rows))

    pe_f32 = pe_table.astype(jnp.float32)
    table_itemsize = jnp.dtype(emb_table.dtype).itemsize
    out_itemsize = jnp.dtype(out_dtype).itemsize

    # VMEM footprint: double-buffered output tiles + gather scratch + PE block.
    need = (2 * rpt * D * out_itemsize
            + rpt * D * table_itemsize
            + 2 * T * D * 4)
    try:
        vmem_cap = int(pltpu.get_tpu_info().vmem_capacity_bytes)
    except Exception:
        vmem_cap = 64 * 1024 * 1024
    vmem_limit = int(max(16 * 1024 * 1024,
                         min(2 * need, vmem_cap - 8 * 1024 * 1024)))

    cost = pl.CostEstimate(
        flops=padded_rows * D,                      # the PE add
        transcendentals=0,
        bytes_accessed=(padded_rows * 4             # ids
                        + padded_rows * D * table_itemsize   # gathered rows
                        + T * D * 4                 # PE table
                        + padded_rows * D * out_itemsize),   # output
    )

    out_flat = pl.pallas_call(
        _gather_pe_kernel,
        out_shape=jax.ShapeDtypeStruct((padded_rows, D), out_dtype),
        grid_spec=pltpu.PrefetchScalarGridSpec(
            num_scalar_prefetch=1,                  # ids -> SMEM
            grid=(num_tiles,),
            in_specs=[
                pl.BlockSpec(memory_space=pl.ANY),              # table in HBM
                pl.BlockSpec((T, D), lambda i, ids: (0, 0)),    # PE (invariant)
            ],
            out_specs=pl.BlockSpec((rpt, D), lambda i, ids: (i, 0)),
            scratch_shapes=[
                pltpu.VMEM((rpt, D), emb_table.dtype),          # gather buffer
                pltpu.SemaphoreType.DMA((1,)),
            ],
        ),
        compiler_params=pltpu.CompilerParams(
            dimension_semantics=("parallel",),
            vmem_limit_bytes=vmem_limit,
        ),
        cost_estimate=cost,
    )(ids, emb_table, pe_f32)

    return out_flat[:total_rows].reshape(N, T, D)


if __name__ == "__main__":
    # Small, deterministic synthetic setup.
    vocab_size = 32
    d_model = 128
    batch = 2
    seq_len = 8

    key = jax.random.PRNGKey(0)
    k_emb, k_ids = jax.random.split(key)

    # nn.Embedding default init: N(0, 1).
    emb_table = jax.random.normal(k_emb, (vocab_size, d_model), dtype=jnp.float32)
    pe_table = sinusoidal_positional_encoding(seq_len, d_model)

    x = jax.random.randint(k_ids, (batch, seq_len), 0, vocab_size, dtype=jnp.int32)

    out = input_id_encoder(x, emb_table, pe_table)
    out = jax.block_until_ready(out)

    # Pure-JAX reference (f32 gather path is bit-exact: each output row is
    # exactly one table row plus the PE row, added in f32).
    ref = emb_table[x] + pe_table[None, :, :]
    assert out.shape == (batch, seq_len, d_model)
    assert jnp.allclose(out, ref, atol=1e-5, rtol=1e-5), "mismatch vs reference"

    print("KERNEL_OK")
</pallas_src>

<mosaic_0001>
module attributes {stable_mosaic.version = 11 : i64} {
  func.func @_gather_pe_kernel(%arg0: i32, %arg1: memref<16xi32, #tpu.memory_space<smem>>, %arg2: memref<32x128xf32, #tpu.memory_space<any>>, %arg3: memref<8x128xf32, #tpu.memory_space<vmem>>, %arg4: memref<8x128xf32, #tpu.memory_space<vmem>>, %arg5: memref<8x128xf32, #tpu.memory_space<vmem>>, %arg6: memref<1x!tpu.dma_semaphore, #tpu.memory_space<semaphore_mem>>) attributes {dimension_semantics = [#tpu.dimension_semantics<parallel>], iteration_bounds = array<i64: 2>, scalar_prefetch = 1 : i64, scratch_operands = 2 : i64, tpu.core_type = #tpu.core_type<tc>, window_params = [{}, {pipeline_mode = #tpu.pipeline_mode<synchronous>, transform_indices = @transform_1, window_bounds = array<i64: 8, 128>}, {transform_indices = @transform_2, window_bounds = array<i64: 8, 128>}]} {
    %c8_i32 = arith.constant 8 : i32
    %0 = arith.muli %arg0, %c8_i32 : i32
    %c0_i32 = arith.constant 0 : i32
    %c8_i32_0 = arith.constant 8 : i32
    %1 = arith.addi %c0_i32, %c8_i32_0 : i32
    %c1_i32 = arith.constant 1 : i32
    scf.for %arg7 = %c0_i32 to %1 step %c1_i32  : i32 {
      %c1_i32_10 = arith.constant 1 : i32
      %10 = arith.muli %arg7, %c1_i32_10 : i32
      %c0_i32_11 = arith.constant 0 : i32
      %11 = arith.addi %c0_i32_11, %10 : i32
      %12 = arith.addi %0, %11 : i32
      %13 = arith.index_cast %12 : i32 to index
      %14 = memref.load %arg1[%13] : memref<16xi32, #tpu.memory_space<smem>>
      %c0_i32_12 = arith.constant 0 : i32
      %c0_i32_13 = arith.constant 0 : i32
      %15 = tpu.memref_slice %arg2[%14, %c0_i32_13] : memref<32x128xf32, #tpu.memory_space<any>> -> memref<1x128xf32, #tpu.memory_space<any>>
      %16 = tpu.memref_squeeze %15 : memref<1x128xf32, #tpu.memory_space<any>> -> memref<128xf32, #tpu.memory_space<any>>
      %c0_i32_14 = arith.constant 0 : i32
      %17 = tpu.memref_slice %arg5[%11, %c0_i32_14] : memref<8x128xf32, #tpu.memory_space<vmem>> -> memref<1x128xf32, #tpu.memory_space<vmem>>
      %18 = tpu.memref_squeeze %17 : memref<1x128xf32, #tpu.memory_space<vmem>> -> memref<128xf32, #tpu.memory_space<vmem>>
      %19 = tpu.memref_slice %arg6[%c0_i32_12] : memref<1x!tpu.dma_semaphore, #tpu.memory_space<semaphore_mem>> -> memref<1x!tpu.dma_semaphore, #tpu.memory_space<semaphore_mem>>
      %20 = tpu.memref_squeeze %19 : memref<1x!tpu.dma_semaphore, #tpu.memory_space<semaphore_mem>> -> memref<!tpu.dma_semaphore, #tpu.memory_space<semaphore_mem>>
      tpu.enqueue_dma source(%16 : memref<128xf32, #tpu.memory_space<any>>) target(%18 : memref<128xf32, #tpu.memory_space<vmem>>) target_semaphore(%20 : memref<!tpu.dma_semaphore, #tpu.memory_space<semaphore_mem>>)
    }
    %c8_i32_1 = arith.constant 8 : i32
    %c0_i32_2 = arith.constant 0 : i32
    %c8_i32_3 = arith.constant 8 : i32
    %2 = arith.addi %c0_i32_2, %c8_i32_3 : i32
    %c1_i32_4 = arith.constant 1 : i32
    scf.for %arg7 = %c0_i32_2 to %2 step %c1_i32_4  : i32 {
      %c0_i32_10 = arith.constant 0 : i32
      %c0_i32_11 = arith.constant 0 : i32
      %c0_i32_12 = arith.constant 0 : i32
      %c0_i32_13 = arith.constant 0 : i32
      %10 = tpu.memref_slice %arg2[%c0_i32_10, %c0_i32_13] : memref<32x128xf32, #tpu.memory_space<any>> -> memref<1x128xf32, #tpu.memory_space<any>>
      %11 = tpu.memref_squeeze %10 : memref<1x128xf32, #tpu.memory_space<any>> -> memref<128xf32, #tpu.memory_space<any>>
      %c0_i32_14 = arith.constant 0 : i32
      %12 = tpu.memref_slice %arg5[%c0_i32_11, %c0_i32_14] : memref<8x128xf32, #tpu.memory_space<vmem>> -> memref<1x128xf32, #tpu.memory_space<vmem>>
      %13 = tpu.memref_squeeze %12 : memref<1x128xf32, #tpu.memory_space<vmem>> -> memref<128xf32, #tpu.memory_space<vmem>>
      %14 = tpu.memref_slice %arg6[%c0_i32_12] : memref<1x!tpu.dma_semaphore, #tpu.memory_space<semaphore_mem>> -> memref<1x!tpu.dma_semaphore, #tpu.memory_space<semaphore_mem>>
      %15 = tpu.memref_squeeze %14 : memref<1x!tpu.dma_semaphore, #tpu.memory_space<semaphore_mem>> -> memref<!tpu.dma_semaphore, #tpu.memory_space<semaphore_mem>>
      tpu.wait_dma2 semaphore(%15 : memref<!tpu.dma_semaphore, #tpu.memory_space<semaphore_mem>>) src(%11 : memref<128xf32, #tpu.memory_space<any>>) dst(%13 : memref<128xf32, #tpu.memory_space<vmem>>)
    }
    %c0 = arith.constant 0 : index
    %c0_5 = arith.constant 0 : index
    %3 = vector.load %arg5[%c0, %c0_5] : memref<8x128xf32, #tpu.memory_space<vmem>>, vector<8x128xf32>
    %c0_6 = arith.constant 0 : index
    %c0_7 = arith.constant 0 : index
    %4 = vector.load %arg3[%c0_6, %c0_7] : memref<8x128xf32, #tpu.memory_space<vmem>>, vector<8x128xf32>
    %5 = vector.shape_cast %3 : vector<8x128xf32> to vector<1x8x128xf32>
    %6 = vector.shape_cast %4 : vector<8x128xf32> to vector<1x8x128xf32>
    %7 = arith.addf %5, %6 : vector<1x8x128xf32>
    %8 = vector.shape_cast %7 : vector<1x8x128xf32> to vector<8x128xf32>
    %c0_8 = arith.constant 0 : index
    %c0_9 = arith.constant 0 : index
    %9 = vector.load %arg4[%c0_8, %c0_9] : memref<8x128xf32, #tpu.memory_space<vmem>>, vector<8x128xf32>
    tpu.vector_store %arg4[%c0_8, %c0_9], %8 {strides = array<i32>} : memref<8x128xf32, #tpu.memory_space<vmem>>, vector<8x128xf32>,
    return
  }
  func.func @transform_1(%arg0: i32, %arg1: memref<16xi32, #tpu.memory_space<smem>>) -> (i32, i32) {
    %c0_i32 = arith.constant 0 : i32
    %c0_i32_0 = arith.constant 0 : i32
    %c0_i32_1 = arith.constant 0 : i32
    return %c0_i32, %c0_i32_0 : i32, i32
  }
  func.func @transform_2(%arg0: i32, %arg1: memref<16xi32, #tpu.memory_space<smem>>) -> (i32, i32) {
    %c0_i32 = arith.constant 0 : i32
    %c0_i32_0 = arith.constant 0 : i32
    return %arg0, %c0_i32 : i32, i32
  }
}

</mosaic_0001>

<bundles_post_ra>
// kernel: tpu_custom_call.1
= control target key start
LH: loop header
LB: loop body
LE: loop exit
PB: predicated region body
PF: predicated region fallthrough
CT: control target
= control target key end

     0   :  { %s463_s12 = smov [#allocation5]   ;;  %s629_s0 = inlined_call_operand.hbm [shape: s32[16], index: 0, kind: input, shape index: {}]   ;;  %s630_s1 = inlined_call_operand.hbm [shape: f32[32,128], index: 1, kind: input, shape index: {}]   ;;  %s631_s2 = inlined_call_operand.hbm [shape: f32[8,128], index: 2, kind: input, shape index: {}]   ;;  %s632_s3 = inlined_call_operand.hbm [shape: f32[16,128], index: 3, kind: output, shape index: {}]  }
   0x1   :  { %9 = dma.hbm_to_smem %s629_s0, 16, %s463_s12, [#allocation4] }
   0x2   :  { %427 = dma.done.wait [#allocation4], 16 }
   0x3   :  { %428 = vsyncadd [#allocation4], 4294967280 }
   0x4   :  { %11 = sfence }
   0x5   :  { %12 = vsyncpa [#allocation7], 0 }
   0x6   :  { %13 = vsyncpa [#allocation8], 0 }
   0x7   :  { %15 = vsyncpa [#allocation8 + $0x1], 0  ;;  %s490_s15 = smov 0   ;;  %s492_s16 = smov 0  }
   0x8   :  { %s494_s17 = smov 0   ;;  %s496_s18 = smov 0  }
   0x9 LB: > { %s511_s0 = sadd.s32 4294967295, %s453_s18   ;;  %s241_s19 = sadd.s32 4294967294, %s453_s18   ;;  %s453_s18 = sphi %s496_s18, %s640_s18   ;;  %s449_s17 = sphi %s494_s17, %s639_s17   ;;  %s445_s16 = sphi %s492_s16, %s638_s16   ;;  %s441_s15 = sphi %s490_s15, %s637_s15  }
   0xa   : > { %s515_s20 = sadd.s32 1, %s453_s18   ;;  %s49_s21 = sadd.s32 1, %s449_s17 }
   0xb   : > { %s46_s22 = ssub.s32 %s453_s18, %s515_s20  ;;  %p59_p0 = scmp.ne.s32.totalorder %s449_s17, %s445_s16 }
   0xc   : > { %p47_p1 = scmp.eq.s32.totalorder %s46_s22, 0  ;;  %p60_p2 = scmp.eq.s32.totalorder %s511_s0, 1 }
   0xd   : > { %p65_p3 = scmp.ne.s32.totalorder %s445_s16, %s441_s15  ;;  %p66_p4 = scmp.eq.s32.totalorder %s241_s19, 1 }
   0xe   : > { %s526_s23 = scalar_select %p47_p1, %s449_s17, %s49_s21  }
   0xf   : > { %p528_p5 = por %p60_p2, %p59_p0  ;;  %p532_p6 = por %p66_p4, %p65_p3 }
  0x10   : > { %p242_p7 = scmp.ge.s32.totalorder %s453_s18, 1  ;;  %p73_p8 = scmp.lt.s32.totalorder %s453_s18, 3 }
  0x11   : > { %s634_s25 = scalar_select %p532_p6, 1, 0 }
  0x12   : > { %p268_p9 = scmp.eq.s32.totalorder %s511_s0, 0  ;;  %p539_p10 = pnand %p242_p7, %p73_p8 }
  0x13   : > { %s464_s27 = smov [#allocation6]  }
  0x14   : > { %s86_s28 = sshll.u32 %s464_s27, 4  ;;  %p260_p11 = pneg %p539_p10  ;;  %s87_s28 = int_to_ptr.vmem [resolvable:$true] %s86_s28 }
  0x15   : > { %s340_s29 = scalar_lea.vmem %s87_s28, 128  ;;  %p348_p3 = scmp.lt.s32.totalorder %s87_s28, %s87_s28 }
  0x16   : > { %p261_p12 = pnand %p268_p9, %p260_p11  ;;  %p341_p0 = scmp.ne.s32.totalorder %s87_s28, %s340_s29 }
  0x17   : > { %p349_p4 = scmp.lt.s32.totalorder %s340_s29, %s340_s29 }
  0x18   : > { %p331_p13 = pneg %p261_p12 }
  0x19   : > { %p350_p6 = por %p349_p4, %p348_p3 }
  0x1a   : > { %p343_p1 = pnand %p341_p0, %p331_p13 }
  0x1c   : > { %p344_p2 = pneg %p343_p1 }
  0x1e   : > { %p351_p7 = pnand %p350_p6, %p344_p2 }
  0x20   : > { %354 = shalt.err (!%p351_p7)
}
  0x21   : > { %263 = dma.hbm_to_vmem [thread:$0]  (!%p261_p12), %s631_s2, 128, %s87_s28, [#allocation7]  }
  0x22   : > { %99 = sbr.rel (%p539_p10) target bundleno = 106 (0x6a), region = 24 }
  0x27   : > { %430 = dma.done.wait (%p268_p9), [#allocation7], 128  }
  0x28   : > { %432 = vsyncadd (%p268_p9), [#allocation7], 4294967168  ;;  %s111_s5 = sand.u32 1, %s445_s16   ;;  %s247_s6 = sshll.u32 %s511_s0, 3 }
  0x29   : > { %s560_s7 = sshll.u32 %s111_s5, 3  ;;  %s563_s9 = smov 0  }
  0x2a   : > { %s113_s8 = scalar_lea.vmem [#allocation9], %s560_s7 }
  0x2b LB: >> { %s121_s10 = sadd.s32 %s457_s9, %s247_s6  ;;  %s125_s12 = scalar_lea.vmem [#allocation2], %s457_s9  ;;  %s457_s9 = sphi %s563_s9, %s120_s9  }
  0x2c   : >> { %s122_s11 = sld [smem:[#allocation5 + %s121_s10]]  ;;  %s133_s13 = sshll.u32 %s125_s12, 4  ;;  %s134_s13 = int_to_ptr.vmem [resolvable:$true] %s133_s13 }
  0x2d   : >> { %s357_s29 = scalar_lea.hbm %s630_s1, 512 }
  0x32   : >> { %s248_s14 = sshll.u32 %s122_s11, 4 }
  0x33   : >> { %s124_s22 = scalar_lea.hbm %s630_s1, %s248_s14 }
  0x34   : >> { %s355_s26 = scalar_lea.hbm %s124_s22, 16  ;;  %p358_p8 = scmp.lt.s32.totalorder %s124_s22, %s630_s1 }
  0x35   : >> { %p356_p6 = scmp.ne.s32.totalorder %s124_s22, %s355_s26  ;;  %p359_p9 = scmp.lt.s32.totalorder %s357_s29, %s355_s26 }
  0x37   : >> { %p360_p10 = por %p359_p9, %p358_p8 }
  0x39   : >> { %p361_p11 = pnand %p360_p10, %p356_p6 }
  0x3b   : >> { %364 = shalt.err (!%p361_p11)  }
  0x3c   : >> { %s365_s10 = scalar_lea.vmem %s134_s13, 16  ;;  %s465_s11 = smov [#allocation2]  }
  0x3d   : >> { %p366_p12 = scmp.ne.s32.totalorder %s134_s13, %s365_s10  ;;  %s367_s12 = sshll.u32 %s465_s11, 4  ;;  %s368_s12 = int_to_ptr.vmem [resolvable:$false] %s367_s12 }
  0x3e   : >> { %s369_s14 = scalar_lea.vmem %s368_s12, 128  ;;  %p370_p13 = scmp.lt.s32.totalorder %s134_s13, %s368_s12 }
  0x3f   : >> { %p371_p0 = scmp.lt.s32.totalorder %s369_s14, %s365_s10 }
  0x41   : >> { %p372_p1 = por %p371_p0, %p370_p13 }
  0x43   : >> { %p373_p2 = pnand %p372_p1, %p366_p12 }
  0x45   : >> { %376 = shalt.err (!%p373_p2)  }
  0x46   : >> { %136 = dma.hbm_to_vmem [thread:$0]  %s124_s22, 16, %s134_s13, [#allocation3] }
  0x47   : >> { %s120_s9 = sadd.s32 1, %s457_s9  }
  0x48   : >> { %p117_p3 = scmp.ge.s32.totalorder %s120_s9, 8  }
  0x49   : > { %s459_s19 = smov (%p117_p3), 0  }
  0x4a   : > { %119 = sbr.rel (!%p117_p3) target bundleno = 43 (0x2b), region = 81 }
  0x4f LB: >> { %433 = dma.done.wait [#allocation3], 16  ;;  %s461_s19 = sphi %s459_s19, %s142_s19  }
  0x50   : >> { %434 = vsyncadd [#allocation3], 4294967280  ;;  %s142_s19 = sadd.s32 1, %s461_s19  }
  0x51   : >> { %p139_p4 = scmp.ge.s32.totalorder %s142_s19, 8  }
  0x52   : > { %v145_v0 = vld [vmem:[#allocation2] sm:$0xff] (%p139_p4)  ;;  %v146_v1 = vld [vmem:[#allocation6] sm:$0xff] (%p139_p4)  ;;  %s250_s13 = sshll.u32 (%p139_p4), %s511_s0, 7  ;;  %s163_s22 = sshll.u32 (%p139_p4), %s113_s8, 4  ;;  %s164_s22 = int_to_ptr.vmem [resolvable:$true] %s163_s22 }
  0x53   : > { %141 = sbr.rel (!%p139_p4) target bundleno = 79 (0x4f), region = 92  ;;  %v147_v2 = vadd.f32 (%p139_p4), %v146_v1, %v145_v0  ;;  %s588_s21 = scalar_lea.hbm (%p139_p4), %s632_s3, %s250_s13 }
  0x54   : > { %s150_s26 = scalar_lea.sflag (%p139_p4), [#allocation8], %s111_s5  ;;  %s377_s27 = scalar_lea.vmem (%p139_p4), %s164_s22, 128 }
  0x55   : > { %148 = vst [vmem:[%s113_s8] sm:$0xff] (%p139_p4), %v147_v2  ;;  %p378_p7 = scmp.ne.s32.totalorder (%p139_p4), %s164_s22, %s377_s27  ;;  %s466_s28 = smov (%p139_p4), [#allocation9]  }
  0x56   : > { %s381_s0 = sshll.u32 (%p139_p4), %s466_s28, 4  ;;  %s382_s0 = int_to_ptr.vmem [resolvable:$false] %s381_s0 }
  0x57   : > { %p379_p6 = pnand (%p139_p4), %p378_p7, %p528_p5  ;;  %s383_s29 = scalar_lea.vmem (%p139_p4), %s382_s0, 256 }
  0x58   : > { %p384_p9 = scmp.lt.s32.totalorder %s164_s22, %s382_s0  ;;  %p385_p10 = scmp.lt.s32.totalorder %s383_s29, %s377_s27 }
  0x59   : > { %p380_p8 = pneg %p379_p6 }
  0x5a   : > { %p386_p11 = por %p385_p10, %p384_p9 }
  0x5c   : > { %p387_p12 = pnand %p386_p11, %p380_p8 }
  0x5e   : > { %390 = shalt.err (!%p387_p12)
}
  0x5f   : > { %s391_s7 = scalar_lea.hbm %s588_s21, 128  ;;  %s395_s30 = scalar_lea.hbm %s632_s3, 256 }
  0x60   : > { %p392_p13 = scmp.ne.s32.totalorder %s588_s21, %s391_s7  ;;  %p396_p2 = scmp.lt.s32.totalorder %s588_s21, %s632_s3 }
  0x61   : > { %p397_p3 = scmp.lt.s32.totalorder %s395_s30, %s391_s7 }
  0x62   : > { %p393_p0 = pnand %p392_p13, %p528_p5 }
  0x63   : > { %p398_p4 = por %p397_p3, %p396_p2 }
  0x64   : > { %p394_p1 = pneg %p393_p0 }
  0x66   : > { %p399_p7 = pnand %p398_p4, %p394_p1 }
  0x68   : > { %402 = shalt.err (!%p399_p7)
}
  0x69   : > { %258 = dma.vmem_to_hbm [thread:$0]  (%p528_p5), %s164_s22, 128, %s588_s21, %s150_s26  }
  0x6a PF: > { %p270_p6 = scmp.ge.s32.totalorder %s453_s18, 2  ;;  %s175_s11 = sand.u32 1, %s441_s15  }
  0x6b   : > { %p636_p8 = scmp.ne.s32.totalorder %s634_s25, 0  ;;  %s176_s12 = scalar_lea.sflag [#allocation8], %s175_s11 }
  0x6d   : > { %p265_p9 = pnand %p270_p6, %p636_p8 }
  0x6f   : > { %p266_p10 = pneg %p265_p9 }
  0x71   : > { %436 = dma.done.wait (%p266_p10), %s176_s12, 128  }
  0x72   : > { %438 = vsyncadd (%p266_p10), %s176_s12, 4294967168  ;;  %p18_p11 = scmp.ge.s32.totalorder %s515_s20, 4   ;;  %s637_s15 = smov %s445_s16 }
  0x73   : > { %s638_s16 = smov %s449_s17  ;;  %s639_s17 = smov %s526_s23 }
  0x74   : > { %s640_s18 = smov %s515_s20  ;;  %20 = sbr.rel (!%p18_p11) target bundleno = 9 (0x9), region = 103 }
  0x79   :  { %181 = vsyncpa [#allocation7], 1 }
  0x7a   :  { %183 = vsyncpa [#allocation7 + $0x1], 1 }
  0x7b   :  { %184 = vsyncpa [#allocation8], 1 }
  0x7c   :  { %186 = vsyncpa [#allocation8 + $0x1], 1 }
  0x7d   :  { %187 = vsyncmov [#allocation3] }
  0x80   :  { %s188_s18 = vpop.sfrf %187 }
  0x81   :  { %p253_p5 = scmp.ne.s32.totalorder %s188_s18, 0 }
  0x83   :  { %192 = shalt.err (%p253_p5)  }

</bundles_post_ra>
